<compile_context>
chip_gen: v7x
topology: tpu7x:2x2x1
jax: 0.10.0
libtpu: 0.0.40
codegen_flags: <defaults>
</compile_context>

<pallas_src>
import functools

import jax
import jax.numpy as jnp
from jax import lax
from jax.experimental import pallas as pl
from jax.experimental.pallas import tpu as pltpu

EPS = 1e-5
D_IN, D1, D2, D3 = 12, 32, 64, 128
N_PASSES = 4


def audio_encoder_kernel(
    x_ref,
    w1_ref, b1_ref, g1_ref, be1_ref,
    w2_ref, b2_ref, g2_ref, be2_ref,
    w3_ref, b3_ref, g3_ref, be3_ref,
    o_ref,
    *scratch,
    n_rows, tile_rows, keep_h3,
):
    if keep_h3:
        h1_ref, h2_ref, h3_ref, s1, ss1, s2, ss2, s3, ss3 = scratch
    else:
        h1_ref, h2_ref, s1, ss1, s2, ss2, s3, ss3 = scratch
        h3_ref = None

    p = pl.program_id(0)                      # pass index 0..3
    t = pl.program_id(1)                      # batch-tile index
    row0 = pl.multiple_of(t * tile_rows, tile_rows)
    rows = pl.ds(row0, tile_rows)
    inv_n = 1.0 / n_rows
    cdt = h1_ref.dtype                        # slab / MXU-input dtype

    @pl.when((p == 0) & (t == 0))
    def _init():
        for r in (s1, ss1, s2, ss2, s3, ss3):
            r[...] = jnp.zeros_like(r)

    def _fold(s_ref, ss_ref, g_ref, be_ref):
        # Training-mode BN (biased var, eps=1e-5) + gamma/beta folded into one
        # affine (scale, shift); overwrites the raw stats in place (done once
        # per pass at t==0, not per tile).
        mean = s_ref[...] * inv_n
        var = jnp.maximum(ss_ref[...] * inv_n - mean * mean, 0.0)
        scale = g_ref[...] * lax.rsqrt(var + EPS)
        s_ref[...] = scale
        ss_ref[...] = be_ref[...] - mean * scale

    def _accum(s_ref, ss_ref, hf):
        # TODO(synk): if the XLU/VALU slot saturates, do these reductions on the
        # (mostly idle) MXU via ones(1, tile) @ h instead.
        s_ref[...] += jnp.sum(hf, axis=0, keepdims=True)
        ss_ref[...] += jnp.sum(hf * hf, axis=0, keepdims=True)

    def _bn_relu(hf, s_ref, ss_ref):
        # single f32 FMA + max per element
        return jnp.maximum(hf * s_ref[...] + ss_ref[...], 0.0)

    # ---- pass 0: layer-1 linear + layer-1 batch stats ----------------------
    @pl.when(p == 0)
    def _p0():
        h1f = jnp.dot(x_ref[...].astype(cdt), w1_ref[...],
                      preferred_element_type=jnp.float32) + b1_ref[...]
        h1_ref[rows, :] = h1f.astype(cdt)
        _accum(s1, ss1, h1f)

    # ---- pass 1: BN+ReLU(h1), layer-2 linear, layer-2 stats ----------------
    @pl.when(p == 1)
    def _p1():
        @pl.when(t == 0)
        def _():
            _fold(s1, ss1, g1_ref, be1_ref)
        a1 = _bn_relu(h1_ref[rows, :].astype(jnp.float32), s1, ss1)
        h2f = jnp.dot(a1.astype(cdt), w2_ref[...],
                      preferred_element_type=jnp.float32) + b2_ref[...]
        h2_ref[rows, :] = h2f.astype(cdt)
        _accum(s2, ss2, h2f)

    # ---- pass 2: BN+ReLU(h2), layer-3 linear, layer-3 stats ----------------
    @pl.when(p == 2)
    def _p2():
        @pl.when(t == 0)
        def _():
            _fold(s2, ss2, g2_ref, be2_ref)
        a2 = _bn_relu(h2_ref[rows, :].astype(jnp.float32), s2, ss2).astype(cdt)
        h3f = jnp.dot(a2, w3_ref[...],
                      preferred_element_type=jnp.float32) + b3_ref[...]
        if keep_h3:
            h3_ref[rows, :] = h3f.astype(cdt)
        else:
            # VMEM-tight fallback: keep a2 (in place over h2) so pass 3 only
            # redoes the matmul, not the BN+ReLU over the whole slab.
            h2_ref[rows, :] = a2
        _accum(s3, ss3, h3f)

    # ---- pass 3: BN+ReLU(h3) streamed out to HBM ----------------------------
    @pl.when(p == N_PASSES - 1)
    def _p3():
        @pl.when(t == 0)
        def _():
            _fold(s3, ss3, g3_ref, be3_ref)
        if keep_h3:
            h3f = h3_ref[rows, :].astype(jnp.float32)
        else:
            h3f = jnp.dot(h2_ref[rows, :], w3_ref[...],
                          preferred_element_type=jnp.float32) + b3_ref[...]
        o_ref[...] = _bn_relu(h3f, s3, ss3).astype(o_ref.dtype)


# ----------------------------------------------------------------------------
# Wrapper / resource accounting
# ----------------------------------------------------------------------------
def _padded_bytes(shape, dtype):
    """VMEM footprint of a 2-D buffer including (sublane, 128-lane) padding."""
    r, c = int(shape[0]), int(shape[1])
    item = jnp.dtype(dtype).itemsize
    sub = 8 * max(1, 4 // item)          # 8 rows for f32, 16 for bf16
    pr = -(-r // sub) * sub
    pc = -(-c // 128) * 128
    return pr * pc * item


def _vmem_capacity_bytes():
    try:
        cap = getattr(pltpu.get_tpu_info(), "vmem_capacity_bytes", None)
        if cap:
            return int(cap)
    except Exception:
        pass
    return 64 << 20  # conservative fallback (v7x per-TensorCore VMEM)


def _pick_tile(n, sublane):
    """Largest tile dividing n (multiple of the slab sublane packing), capped at
    2048 so the double-buffered x/out tiles stay within a few MiB."""
    for cand in (2048, 1024, 512, 256, 128, 64, 32, 16, 8):
        if cand >= sublane and n % cand == 0:
            return cand
    return n  # single full-batch tile (offset 0, always aligned)


def audio_encoder(x, params, *, tile_rows=None, compute_dtype=jnp.bfloat16,
                  out_dtype=jnp.float32, keep_h3=None):
    """x: (N, 12) float32.  Returns (N, 128) in out_dtype (f32 default to match
    the PyTorch module; bf16 halves HBM writeback if downstream tolerates it)."""
    n = x.shape[0]
    assert x.shape[1] == D_IN
    itemsize = jnp.dtype(compute_dtype).itemsize
    sublane = 8 * max(1, 4 // itemsize)
    if tile_rows is None:
        tile_rows = _pick_tile(n, sublane)
    assert n % tile_rows == 0, "batch must be divisible by tile_rows"
    num_tiles = n // tile_rows
    if num_tiles > 1:
        assert tile_rows % sublane == 0, (
            "tile_rows must be a multiple of the slab sublane packing "
            f"({sublane} for {jnp.dtype(compute_dtype).name})")
    last = N_PASSES - 1

    # Weights feed the MXU in compute_dtype; biases / BN affine stay f32.
    args = (
        x,
        params["w1"].astype(compute_dtype), params["b1"], params["g1"], params["be1"],
        params["w2"].astype(compute_dtype), params["b2"], params["g2"], params["be2"],
        params["w3"].astype(compute_dtype), params["b3"], params["g3"], params["be3"],
    )

    # --- padded VMEM accounting ------------------------------------------------
    budget = int(0.85 * _vmem_capacity_bytes())          # ~15% compiler headroom
    slab12 = (_padded_bytes((n, D1), compute_dtype)
              + _padded_bytes((n, D2), compute_dtype))
    slab3 = _padded_bytes((n, D3), compute_dtype)
    stream = 2 * (_padded_bytes((tile_rows, D_IN), x.dtype)
                  + _padded_bytes((tile_rows, D3), out_dtype))   # double-buffered
    param_b = 2 * sum(_padded_bytes(a.shape, a.dtype) for a in args[1:])
    stats_b = 6 * _padded_bytes((1, D3), jnp.float32)
    margin = 4 << 20                                      # compiler internal scratch
    base_need = slab12 + stream + param_b + stats_b + margin

    if keep_h3 is None:
        keep_h3 = (base_need + slab3) <= budget
    need = base_need + (slab3 if keep_h3 else 0)
    if need > budget:
        # TODO(synk): HBM-streamed activation slabs (two grid passes per layer)
        # for batches that do not fit in VMEM.
        raise ValueError(
            f"batch of {n} rows needs ~{need >> 20} MiB VMEM (padded), "
            f"budget is {budget >> 20} MiB")
    vmem_limit = min(max(need, 32 << 20), budget)

    # --- BlockSpecs -------------------------------------------------------------
    # x is consumed only in pass 0; params use constant maps (fetched once).
    # Output blocks only advance during the final pass, so each tile is written
    # back to HBM exactly once.
    def x_map(p, t):
        return (jnp.where(p == 0, t, 0), 0)

    def o_map(p, t):
        return (jnp.where(p == last, t, 0), 0)

    def const_map(p, t):
        return (0, 0)

    param_specs = [pl.BlockSpec(a.shape, const_map) for a in args[1:]]
    in_specs = [pl.BlockSpec((tile_rows, D_IN), x_map)] + param_specs
    out_spec = pl.BlockSpec((tile_rows, D3), o_map)

    scratch_shapes = [
        pltpu.VMEM((n, D1), compute_dtype),   # h1 slab
        pltpu.VMEM((n, D2), compute_dtype),   # h2 slab (becomes a2 in fallback)
    ]
    if keep_h3:
        scratch_shapes.append(pltpu.VMEM((n, D3), compute_dtype))  # h3 slab
    scratch_shapes += [pltpu.VMEM((1, d), jnp.float32)
                       for d in (D1, D1, D2, D2, D3, D3)]          # s/ss then scale/shift

    kernel = functools.partial(audio_encoder_kernel, n_rows=n,
                               tile_rows=tile_rows, keep_h3=keep_h3)

    return pl.pallas_call(
        kernel,
        out_shape=jax.ShapeDtypeStruct((n, D3), out_dtype),
        grid_spec=pltpu.PrefetchScalarGridSpec(
            num_scalar_prefetch=0,
            grid=(N_PASSES, num_tiles),
            in_specs=in_specs,
            out_specs=out_spec,
            scratch_shapes=scratch_shapes,
        ),
        compiler_params=pltpu.CompilerParams(
            # stats carried across tiles and passes -> sequential on both axes
            dimension_semantics=("arbitrary", "arbitrary"),
            vmem_limit_bytes=vmem_limit,
        ),
    )(*args)


# ----------------------------------------------------------------------------
# Init + reference
# ----------------------------------------------------------------------------
def init_params(key):
    """Matches the PyTorch module's __init__:
    Linear weights: kaiming_uniform_(fan_in, relu) -> U(-sqrt(6/fan_in), +sqrt(6/fan_in))
    Linear biases:  PyTorch default U(-1/sqrt(fan_in), +1/sqrt(fan_in))
    BN: gamma = 1, beta = 0.   Weights stored as (in, out) = PyTorch W.T."""
    dims = [(D_IN, D1), (D1, D2), (D2, D3)]
    params = {}
    keys = jax.random.split(key, 2 * len(dims))
    for i, (fan_in, fan_out) in enumerate(dims, start=1):
        wb = (6.0 / fan_in) ** 0.5
        bb = 1.0 / (fan_in ** 0.5)
        params[f"w{i}"] = jax.random.uniform(
            keys[2 * (i - 1)], (fan_in, fan_out), jnp.float32, -wb, wb)
        params[f"b{i}"] = jax.random.uniform(
            keys[2 * (i - 1) + 1], (1, fan_out), jnp.float32, -bb, bb)
        params[f"g{i}"] = jnp.ones((1, fan_out), jnp.float32)
        params[f"be{i}"] = jnp.zeros((1, fan_out), jnp.float32)
    return params


def reference(x, params, compute_dtype=jnp.float32, round_h3=True):
    """Plain-JAX forward (training-mode BN).  With compute_dtype=f32 this is the
    exact original-module math; with bf16 it mimics the kernel's slab/matmul
    casts so the comparison stays tight."""
    h = x
    for i in (1, 2, 3):
        w = params[f"w{i}"].astype(compute_dtype)
        pre = jnp.dot(h.astype(compute_dtype), w,
                      preferred_element_type=jnp.float32) + params[f"b{i}"]
        mean = jnp.mean(pre, axis=0, keepdims=True)
        var = jnp.mean((pre - mean) ** 2, axis=0, keepdims=True)
        if i < 3 or round_h3:
            hval = pre.astype(compute_dtype).astype(jnp.float32)  # slab round-trip
        else:
            hval = pre
        h = (hval - mean) / jnp.sqrt(var + EPS)
        h = h * params[f"g{i}"] + params[f"be{i}"]
        h = jnp.maximum(h, 0.0)
    return h


if __name__ == "__main__":
    key = jax.random.PRNGKey(0)
    pkey, k1, k2 = jax.random.split(key, 3)
    params = init_params(pkey)

    # case 1: exact f32 path (module-faithful numerics), single tile
    x1 = jax.random.normal(k1, (8, D_IN), jnp.float32)
    out1 = jax.block_until_ready(audio_encoder(x1, params, compute_dtype=jnp.float32))
    ref1 = reference(x1, params, compute_dtype=jnp.float32)
    assert out1.shape == (8, D3), out1.shape
    assert jnp.allclose(out1, ref1, atol=1e-4, rtol=1e-4), float(
        jnp.max(jnp.abs(out1 - ref1)))

    # case 2: default bf16 slabs, multi-tile pipelined path, h3 slab kept
    x2 = jax.random.normal(k2, (64, D_IN), jnp.float32)
    out2 = jax.block_until_ready(
        audio_encoder(x2, params, tile_rows=16, keep_h3=True))
    ref2 = reference(x2, params, compute_dtype=jnp.bfloat16, round_h3=True)
    assert out2.shape == (64, D3), out2.shape
    assert jnp.allclose(out2, ref2, atol=5e-3, rtol=5e-3), float(
        jnp.max(jnp.abs(out2 - ref2)))

    # case 3: bf16, recompute-h3 fallback (the v7x / large-N VMEM-tight mode)
    out3 = jax.block_until_ready(
        audio_encoder(x2, params, tile_rows=16, keep_h3=False))
    ref3 = reference(x2, params, compute_dtype=jnp.bfloat16, round_h3=False)
    assert jnp.allclose(out3, ref3, atol=5e-3, rtol=5e-3), float(
        jnp.max(jnp.abs(out3 - ref3)))

    print("KERNEL_OK")
</pallas_src>

<mosaic_0001>
module attributes {stable_mosaic.version = 11 : i64} {
  func.func @audio_encoder_kernel(%arg0: i32, %arg1: i32, %arg2: memref<8x12xf32, #tpu.memory_space<vmem>>, %arg3: memref<12x32xf32, #tpu.memory_space<vmem>>, %arg4: memref<1x32xf32, #tpu.memory_space<vmem>>, %arg5: memref<1x32xf32, #tpu.memory_space<vmem>>, %arg6: memref<1x32xf32, #tpu.memory_space<vmem>>, %arg7: memref<32x64xf32, #tpu.memory_space<vmem>>, %arg8: memref<1x64xf32, #tpu.memory_space<vmem>>, %arg9: memref<1x64xf32, #tpu.memory_space<vmem>>, %arg10: memref<1x64xf32, #tpu.memory_space<vmem>>, %arg11: memref<64x128xf32, #tpu.memory_space<vmem>>, %arg12: memref<1x128xf32, #tpu.memory_space<vmem>>, %arg13: memref<1x128xf32, #tpu.memory_space<vmem>>, %arg14: memref<1x128xf32, #tpu.memory_space<vmem>>, %arg15: memref<8x128xf32, #tpu.memory_space<vmem>>, %arg16: memref<8x32xf32, #tpu.memory_space<vmem>>, %arg17: memref<8x64xf32, #tpu.memory_space<vmem>>, %arg18: memref<8x128xf32, #tpu.memory_space<vmem>>, %arg19: memref<1x32xf32, #tpu.memory_space<vmem>>, %arg20: memref<1x32xf32, #tpu.memory_space<vmem>>, %arg21: memref<1x64xf32, #tpu.memory_space<vmem>>, %arg22: memref<1x64xf32, #tpu.memory_space<vmem>>, %arg23: memref<1x128xf32, #tpu.memory_space<vmem>>, %arg24: memref<1x128xf32, #tpu.memory_space<vmem>>) attributes {dimension_semantics = [#tpu.dimension_semantics<arbitrary>, #tpu.dimension_semantics<arbitrary>], iteration_bounds = array<i64: 4, 1>, scalar_prefetch = 0 : i64, scratch_operands = 9 : i64, tpu.core_type = #tpu.core_type<tc>, window_params = [{transform_indices = @transform_0, window_bounds = array<i64: 8, 12>}, {pipeline_mode = #tpu.pipeline_mode<synchronous>, transform_indices = @transform_1, window_bounds = array<i64: 12, 32>}, {pipeline_mode = #tpu.pipeline_mode<synchronous>, transform_indices = @transform_2, window_bounds = array<i64: 1, 32>}, {pipeline_mode = #tpu.pipeline_mode<synchronous>, transform_indices = @transform_3, window_bounds = array<i64: 1, 32>}, {pipeline_mode = #tpu.pipeline_mode<synchronous>, transform_indices = @transform_4, window_bounds = array<i64: 1, 32>}, {pipeline_mode = #tpu.pipeline_mode<synchronous>, transform_indices = @transform_5, window_bounds = array<i64: 32, 64>}, {pipeline_mode = #tpu.pipeline_mode<synchronous>, transform_indices = @transform_6, window_bounds = array<i64: 1, 64>}, {pipeline_mode = #tpu.pipeline_mode<synchronous>, transform_indices = @transform_7, window_bounds = array<i64: 1, 64>}, {pipeline_mode = #tpu.pipeline_mode<synchronous>, transform_indices = @transform_8, window_bounds = array<i64: 1, 64>}, {pipeline_mode = #tpu.pipeline_mode<synchronous>, transform_indices = @transform_9, window_bounds = array<i64: 64, 128>}, {pipeline_mode = #tpu.pipeline_mode<synchronous>, transform_indices = @transform_10, window_bounds = array<i64: 1, 128>}, {pipeline_mode = #tpu.pipeline_mode<synchronous>, transform_indices = @transform_11, window_bounds = array<i64: 1, 128>}, {pipeline_mode = #tpu.pipeline_mode<synchronous>, transform_indices = @transform_12, window_bounds = array<i64: 1, 128>}, {transform_indices = @transform_13, window_bounds = array<i64: 8, 128>}]} {
    %c8_i32 = arith.constant 8 : i32
    %0 = arith.muli %arg1, %c8_i32 : i32
    %1 = tpu.assume_multiple %0, 8 : i32
    %c0_i32 = arith.constant 0 : i32
    %2 = arith.cmpi eq, %arg0, %c0_i32 : i32
    %c0_i32_0 = arith.constant 0 : i32
    %3 = arith.cmpi eq, %arg1, %c0_i32_0 : i32
    %4 = arith.andi %2, %3 : i1
    %5 = arith.extui %4 : i1 to i32
    %c0_i32_1 = arith.constant 0 : i32
    %6 = arith.cmpi ne, %5, %c0_i32_1 : i32
    scf.if %6 {
      %cst = arith.constant 0.000000e+00 : f32
      %19 = vector.broadcast %cst : f32 to vector<1x32xf32>
      %c0 = arith.constant 0 : index
      %c0_7 = arith.constant 0 : index
      %20 = vector.load %arg19[%c0, %c0_7] : memref<1x32xf32, #tpu.memory_space<vmem>>, vector<1x32xf32>
      tpu.vector_store %arg19[%c0, %c0_7], %19 {strides = array<i32>} : memref<1x32xf32, #tpu.memory_space<vmem>>, vector<1x32xf32>,
      %cst_8 = arith.constant 0.000000e+00 : f32
      %21 = vector.broadcast %cst_8 : f32 to vector<1x32xf32>
      %c0_9 = arith.constant 0 : index
      %c0_10 = arith.constant 0 : index
      %22 = vector.load %arg20[%c0_9, %c0_10] : memref<1x32xf32, #tpu.memory_space<vmem>>, vector<1x32xf32>
      tpu.vector_store %arg20[%c0_9, %c0_10], %21 {strides = array<i32>} : memref<1x32xf32, #tpu.memory_space<vmem>>, vector<1x32xf32>,
      %cst_11 = arith.constant 0.000000e+00 : f32
      %23 = vector.broadcast %cst_11 : f32 to vector<1x64xf32>
      %c0_12 = arith.constant 0 : index
      %c0_13 = arith.constant 0 : index
      %24 = vector.load %arg21[%c0_12, %c0_13] : memref<1x64xf32, #tpu.memory_space<vmem>>, vector<1x64xf32>
      tpu.vector_store %arg21[%c0_12, %c0_13], %23 {strides = array<i32>} : memref<1x64xf32, #tpu.memory_space<vmem>>, vector<1x64xf32>,
      %cst_14 = arith.constant 0.000000e+00 : f32
      %25 = vector.broadcast %cst_14 : f32 to vector<1x64xf32>
      %c0_15 = arith.constant 0 : index
      %c0_16 = arith.constant 0 : index
      %26 = vector.load %arg22[%c0_15, %c0_16] : memref<1x64xf32, #tpu.memory_space<vmem>>, vector<1x64xf32>
      tpu.vector_store %arg22[%c0_15, %c0_16], %25 {strides = array<i32>} : memref<1x64xf32, #tpu.memory_space<vmem>>, vector<1x64xf32>,
      %cst_17 = arith.constant 0.000000e+00 : f32
      %27 = vector.broadcast %cst_17 : f32 to vector<1x128xf32>
      %c0_18 = arith.constant 0 : index
      %c0_19 = arith.constant 0 : index
      %28 = vector.load %arg23[%c0_18, %c0_19] : memref<1x128xf32, #tpu.memory_space<vmem>>, vector<1x128xf32>
      tpu.vector_store %arg23[%c0_18, %c0_19], %27 {strides = array<i32>} : memref<1x128xf32, #tpu.memory_space<vmem>>, vector<1x128xf32>,
      %cst_20 = arith.constant 0.000000e+00 : f32
      %29 = vector.broadcast %cst_20 : f32 to vector<1x128xf32>
      %c0_21 = arith.constant 0 : index
      %c0_22 = arith.constant 0 : index
      %30 = vector.load %arg24[%c0_21, %c0_22] : memref<1x128xf32, #tpu.memory_space<vmem>>, vector<1x128xf32>
      tpu.vector_store %arg24[%c0_21, %c0_22], %29 {strides = array<i32>} : memref<1x128xf32, #tpu.memory_space<vmem>>, vector<1x128xf32>,
    } else {
    }
    %c0_i32_2 = arith.constant 0 : i32
    %7 = arith.cmpi eq, %arg0, %c0_i32_2 : i32
    %8 = arith.extui %7 : i1 to i32
    %c0_i32_3 = arith.constant 0 : i32
    %9 = arith.cmpi ne, %8, %c0_i32_3 : i32
    scf.if %9 {
      %c0 = arith.constant 0 : index
      %c0_7 = arith.constant 0 : index
      %19 = vector.load %arg2[%c0, %c0_7] : memref<8x12xf32, #tpu.memory_space<vmem>>, vector<8x12xf32>
      %c0_8 = arith.constant 0 : index
      %c0_9 = arith.constant 0 : index
      %20 = vector.load %arg3[%c0_8, %c0_9] : memref<12x32xf32, #tpu.memory_space<vmem>>, vector<12x32xf32>
      %cst = arith.constant dense<0.000000e+00> : vector<8x32xf32>
      %21 = tpu.matmul %19, %20, %cst {dimension_numbers = #tpu.dot_dimension_numbers<[1], [0], [0], [1], [0, 0, 1, 1], [], []>} : vector<8x12xf32>, vector<12x32xf32>, vector<8x32xf32> -> vector<8x32xf32>
      %c0_10 = arith.constant 0 : index
      %c0_11 = arith.constant 0 : index
      %22 = vector.load %arg4[%c0_10, %c0_11] : memref<1x32xf32, #tpu.memory_space<vmem>>, vector<1x32xf32>
      %23 = vector.broadcast %22 : vector<1x32xf32> to vector<8x32xf32>
      %24 = arith.addf %21, %23 : vector<8x32xf32>
      %25 = arith.index_cast %1 : i32 to index
      %c0_12 = arith.constant 0 : index
      %26 = vector.load %arg16[%25, %c0_12] : memref<8x32xf32, #tpu.memory_space<vmem>>, vector<8x32xf32>
      tpu.vector_store %arg16[%25, %c0_12], %24 {strides = array<i32>} : memref<8x32xf32, #tpu.memory_space<vmem>>, vector<8x32xf32>,
      %c0_13 = arith.constant 0 : index
      %c0_14 = arith.constant 0 : index
      %27 = vector.load %arg19[%c0_13, %c0_14] : memref<1x32xf32, #tpu.memory_space<vmem>>, vector<1x32xf32>
      %cst_15 = arith.constant dense<0.000000e+00> : vector<32xf32>
      %28 = vector.multi_reduction <add>, %24, %cst_15 [0] : vector<8x32xf32> to vector<32xf32>
      %29 = vector.shape_cast %28 : vector<32xf32> to vector<1x32xf32>
      %30 = arith.addf %27, %29 : vector<1x32xf32>
      %c0_16 = arith.constant 0 : index
      %c0_17 = arith.constant 0 : index
      %31 = vector.load %arg19[%c0_16, %c0_17] : memref<1x32xf32, #tpu.memory_space<vmem>>, vector<1x32xf32>
      tpu.vector_store %arg19[%c0_16, %c0_17], %30 {strides = array<i32>} : memref<1x32xf32, #tpu.memory_space<vmem>>, vector<1x32xf32>,
      %c0_18 = arith.constant 0 : index
      %c0_19 = arith.constant 0 : index
      %32 = vector.load %arg20[%c0_18, %c0_19] : memref<1x32xf32, #tpu.memory_space<vmem>>, vector<1x32xf32>
      %33 = arith.mulf %24, %24 : vector<8x32xf32>
      %cst_20 = arith.constant dense<0.000000e+00> : vector<32xf32>
      %34 = vector.multi_reduction <add>, %33, %cst_20 [0] : vector<8x32xf32> to vector<32xf32>
      %35 = vector.shape_cast %34 : vector<32xf32> to vector<1x32xf32>
      %36 = arith.addf %32, %35 : vector<1x32xf32>
      %c0_21 = arith.constant 0 : index
      %c0_22 = arith.constant 0 : index
      %37 = vector.load %arg20[%c0_21, %c0_22] : memref<1x32xf32, #tpu.memory_space<vmem>>, vector<1x32xf32>
      tpu.vector_store %arg20[%c0_21, %c0_22], %36 {strides = array<i32>} : memref<1x32xf32, #tpu.memory_space<vmem>>, vector<1x32xf32>,
    } else {
    }
    %c1_i32 = arith.constant 1 : i32
    %10 = arith.cmpi eq, %arg0, %c1_i32 : i32
    %11 = arith.extui %10 : i1 to i32
    %c0_i32_4 = arith.constant 0 : i32
    %12 = arith.cmpi ne, %11, %c0_i32_4 : i32
    scf.if %12 {
      %c0_i32_7 = arith.constant 0 : i32
      %19 = arith.cmpi eq, %arg1, %c0_i32_7 : i32
      %20 = arith.extui %19 : i1 to i32
      %c0_i32_8 = arith.constant 0 : i32
      %21 = arith.cmpi ne, %20, %c0_i32_8 : i32
      scf.if %21 {
        %c0_29 = arith.constant 0 : index
        %c0_30 = arith.constant 0 : index
        %50 = vector.load %arg19[%c0_29, %c0_30] : memref<1x32xf32, #tpu.memory_space<vmem>>, vector<1x32xf32>
        %cst_31 = arith.constant 1.250000e-01 : f32
        %51 = vector.broadcast %cst_31 : f32 to vector<1x32xf32>
        %52 = arith.mulf %50, %51 : vector<1x32xf32>
        %c0_32 = arith.constant 0 : index
        %c0_33 = arith.constant 0 : index
        %53 = vector.load %arg20[%c0_32, %c0_33] : memref<1x32xf32, #tpu.memory_space<vmem>>, vector<1x32xf32>
        %cst_34 = arith.constant 1.250000e-01 : f32
        %54 = vector.broadcast %cst_34 : f32 to vector<1x32xf32>
        %55 = arith.mulf %53, %54 : vector<1x32xf32>
        %56 = arith.mulf %52, %52 : vector<1x32xf32>
        %57 = arith.subf %55, %56 : vector<1x32xf32>
        %cst_35 = arith.constant 0.000000e+00 : f32
        %58 = vector.broadcast %cst_35 : f32 to vector<1x32xf32>
        %59 = arith.maximumf %57, %58 : vector<1x32xf32>
        %c0_36 = arith.constant 0 : index
        %c0_37 = arith.constant 0 : index
        %60 = vector.load %arg5[%c0_36, %c0_37] : memref<1x32xf32, #tpu.memory_space<vmem>>, vector<1x32xf32>
        %cst_38 = arith.constant 9.99999974E-6 : f32
        %61 = vector.broadcast %cst_38 : f32 to vector<1x32xf32>
        %62 = arith.addf %59, %61 : vector<1x32xf32>
        %63 = math.rsqrt %62 : vector<1x32xf32>
        %64 = arith.mulf %60, %63 : vector<1x32xf32>
        %c0_39 = arith.constant 0 : index
        %c0_40 = arith.constant 0 : index
        %65 = vector.load %arg19[%c0_39, %c0_40] : memref<1x32xf32, #tpu.memory_space<vmem>>, vector<1x32xf32>
        tpu.vector_store %arg19[%c0_39, %c0_40], %64 {strides = array<i32>} : memref<1x32xf32, #tpu.memory_space<vmem>>, vector<1x32xf32>,
        %c0_41 = arith.constant 0 : index
        %c0_42 = arith.constant 0 : index
        %66 = vector.load %arg6[%c0_41, %c0_42] : memref<1x32xf32, #tpu.memory_space<vmem>>, vector<1x32xf32>
        %67 = arith.mulf %52, %64 : vector<1x32xf32>
        %68 = arith.subf %66, %67 : vector<1x32xf32>
        %c0_43 = arith.constant 0 : index
        %c0_44 = arith.constant 0 : index
        %69 = vector.load %arg20[%c0_43, %c0_44] : memref<1x32xf32, #tpu.memory_space<vmem>>, vector<1x32xf32>
        tpu.vector_store %arg20[%c0_43, %c0_44], %68 {strides = array<i32>} : memref<1x32xf32, #tpu.memory_space<vmem>>, vector<1x32xf32>,
      } else {
      }
      %22 = arith.index_cast %1 : i32 to index
      %c0 = arith.constant 0 : index
      %23 = vector.load %arg16[%22, %c0] : memref<8x32xf32, #tpu.memory_space<vmem>>, vector<8x32xf32>
      %c0_9 = arith.constant 0 : index
      %c0_10 = arith.constant 0 : index
      %24 = vector.load %arg19[%c0_9, %c0_10] : memref<1x32xf32, #tpu.memory_space<vmem>>, vector<1x32xf32>
      %25 = vector.broadcast %24 : vector<1x32xf32> to vector<8x32xf32>
      %26 = arith.mulf %23, %25 : vector<8x32xf32>
      %c0_11 = arith.constant 0 : index
      %c0_12 = arith.constant 0 : index
      %27 = vector.load %arg20[%c0_11, %c0_12] : memref<1x32xf32, #tpu.memory_space<vmem>>, vector<1x32xf32>
      %28 = vector.broadcast %27 : vector<1x32xf32> to vector<8x32xf32>
      %29 = arith.addf %26, %28 : vector<8x32xf32>
      %cst = arith.constant 0.000000e+00 : f32
      %30 = vector.broadcast %cst : f32 to vector<8x32xf32>
      %31 = arith.maximumf %29, %30 : vector<8x32xf32>
      %c0_13 = arith.constant 0 : index
      %c0_14 = arith.constant 0 : index
      %32 = vector.load %arg7[%c0_13, %c0_14] : memref<32x64xf32, #tpu.memory_space<vmem>>, vector<32x64xf32>
      %cst_15 = arith.constant dense<0.000000e+00> : vector<8x64xf32>
      %33 = tpu.matmul %31, %32, %cst_15 {dimension_numbers = #tpu.dot_dimension_numbers<[1], [0], [0], [1], [0, 0, 1, 1], [], []>} : vector<8x32xf32>, vector<32x64xf32>, vector<8x64xf32> -> vector<8x64xf32>
      %c0_16 = arith.constant 0 : index
      %c0_17 = arith.constant 0 : index
      %34 = vector.load %arg8[%c0_16, %c0_17] : memref<1x64xf32, #tpu.memory_space<vmem>>, vector<1x64xf32>
      %35 = vector.broadcast %34 : vector<1x64xf32> to vector<8x64xf32>
      %36 = arith.addf %33, %35 : vector<8x64xf32>
      %37 = arith.index_cast %1 : i32 to index
      %c0_18 = arith.constant 0 : index
      %38 = vector.load %arg17[%37, %c0_18] : memref<8x64xf32, #tpu.memory_space<vmem>>, vector<8x64xf32>
      tpu.vector_store %arg17[%37, %c0_18], %36 {strides = array<i32>} : memref<8x64xf32, #tpu.memory_space<vmem>>, vector<8x64xf32>,
      %c0_19 = arith.constant 0 : index
      %c0_20 = arith.constant 0 : index
      %39 = vector.load %arg21[%c0_19, %c0_20] : memref<1x64xf32, #tpu.memory_space<vmem>>, vector<1x64xf32>
      %cst_21 = arith.constant dense<0.000000e+00> : vector<64xf32>
      %40 = vector.multi_reduction <add>, %36, %cst_21 [0] : vector<8x64xf32> to vector<64xf32>
      %41 = vector.shape_cast %40 : vector<64xf32> to vector<1x64xf32>
      %42 = arith.addf %39, %41 : vector<1x64xf32>
      %c0_22 = arith.constant 0 : index
      %c0_23 = arith.constant 0 : index
      %43 = vector.load %arg21[%c0_22, %c0_23] : memref<1x64xf32, #tpu.memory_space<vmem>>, vector<1x64xf32>
      tpu.vector_store %arg21[%c0_22, %c0_23], %42 {strides = array<i32>} : memref<1x64xf32, #tpu.memory_space<vmem>>, vector<1x64xf32>,
      %c0_24 = arith.constant 0 : index
      %c0_25 = arith.constant 0 : index
      %44 = vector.load %arg22[%c0_24, %c0_25] : memref<1x64xf32, #tpu.memory_space<vmem>>, vector<1x64xf32>
      %45 = arith.mulf %36, %36 : vector<8x64xf32>
      %cst_26 = arith.constant dense<0.000000e+00> : vector<64xf32>
      %46 = vector.multi_reduction <add>, %45, %cst_26 [0] : vector<8x64xf32> to vector<64xf32>
      %47 = vector.shape_cast %46 : vector<64xf32> to vector<1x64xf32>
      %48 = arith.addf %44, %47 : vector<1x64xf32>
      %c0_27 = arith.constant 0 : index
      %c0_28 = arith.constant 0 : index
      %49 = vector.load %arg22[%c0_27, %c0_28] : memref<1x64xf32, #tpu.memory_space<vmem>>, vector<1x64xf32>
      tpu.vector_store %arg22[%c0_27, %c0_28], %48 {strides = array<i32>} : memref<1x64xf32, #tpu.memory_space<vmem>>, vector<1x64xf32>,
    } else {
    }
    %c2_i32 = arith.constant 2 : i32
    %13 = arith.cmpi eq, %arg0, %c2_i32 : i32
    %14 = arith.extui %13 : i1 to i32
    %c0_i32_5 = arith.constant 0 : i32
    %15 = arith.cmpi ne, %14, %c0_i32_5 : i32
    scf.if %15 {
      %c0_i32_7 = arith.constant 0 : i32
      %19 = arith.cmpi eq, %arg1, %c0_i32_7 : i32
      %20 = arith.extui %19 : i1 to i32
      %c0_i32_8 = arith.constant 0 : i32
      %21 = arith.cmpi ne, %20, %c0_i32_8 : i32
      scf.if %21 {
        %c0_29 = arith.constant 0 : index
        %c0_30 = arith.constant 0 : index
        %50 = vector.load %arg21[%c0_29, %c0_30] : memref<1x64xf32, #tpu.memory_space<vmem>>, vector<1x64xf32>
        %cst_31 = arith.constant 1.250000e-01 : f32
        %51 = vector.broadcast %cst_31 : f32 to vector<1x64xf32>
        %52 = arith.mulf %50, %51 : vector<1x64xf32>
        %c0_32 = arith.constant 0 : index
        %c0_33 = arith.constant 0 : index
        %53 = vector.load %arg22[%c0_32, %c0_33] : memref<1x64xf32, #tpu.memory_space<vmem>>, vector<1x64xf32>
        %cst_34 = arith.constant 1.250000e-01 : f32
        %54 = vector.broadcast %cst_34 : f32 to vector<1x64xf32>
        %55 = arith.mulf %53, %54 : vector<1x64xf32>
        %56 = arith.mulf %52, %52 : vector<1x64xf32>
        %57 = arith.subf %55, %56 : vector<1x64xf32>
        %cst_35 = arith.constant 0.000000e+00 : f32
        %58 = vector.broadcast %cst_35 : f32 to vector<1x64xf32>
        %59 = arith.maximumf %57, %58 : vector<1x64xf32>
        %c0_36 = arith.constant 0 : index
        %c0_37 = arith.constant 0 : index
        %60 = vector.load %arg9[%c0_36, %c0_37] : memref<1x64xf32, #tpu.memory_space<vmem>>, vector<1x64xf32>
        %cst_38 = arith.constant 9.99999974E-6 : f32
        %61 = vector.broadcast %cst_38 : f32 to vector<1x64xf32>
        %62 = arith.addf %59, %61 : vector<1x64xf32>
        %63 = math.rsqrt %62 : vector<1x64xf32>
        %64 = arith.mulf %60, %63 : vector<1x64xf32>
        %c0_39 = arith.constant 0 : index
        %c0_40 = arith.constant 0 : index
        %65 = vector.load %arg21[%c0_39, %c0_40] : memref<1x64xf32, #tpu.memory_space<vmem>>, vector<1x64xf32>
        tpu.vector_store %arg21[%c0_39, %c0_40], %64 {strides = array<i32>} : memref<1x64xf32, #tpu.memory_space<vmem>>, vector<1x64xf32>,
        %c0_41 = arith.constant 0 : index
        %c0_42 = arith.constant 0 : index
        %66 = vector.load %arg10[%c0_41, %c0_42] : memref<1x64xf32, #tpu.memory_space<vmem>>, vector<1x64xf32>
        %67 = arith.mulf %52, %64 : vector<1x64xf32>
        %68 = arith.subf %66, %67 : vector<1x64xf32>
        %c0_43 = arith.constant 0 : index
        %c0_44 = arith.constant 0 : index
        %69 = vector.load %arg22[%c0_43, %c0_44] : memref<1x64xf32, #tpu.memory_space<vmem>>, vector<1x64xf32>
        tpu.vector_store %arg22[%c0_43, %c0_44], %68 {strides = array<i32>} : memref<1x64xf32, #tpu.memory_space<vmem>>, vector<1x64xf32>,
      } else {
      }
      %22 = arith.index_cast %1 : i32 to index
      %c0 = arith.constant 0 : index
      %23 = vector.load %arg17[%22, %c0] : memref<8x64xf32, #tpu.memory_space<vmem>>, vector<8x64xf32>
      %c0_9 = arith.constant 0 : index
      %c0_10 = arith.constant 0 : index
      %24 = vector.load %arg21[%c0_9, %c0_10] : memref<1x64xf32, #tpu.memory_space<vmem>>, vector<1x64xf32>
      %25 = vector.broadcast %24 : vector<1x64xf32> to vector<8x64xf32>
      %26 = arith.mulf %23, %25 : vector<8x64xf32>
      %c0_11 = arith.constant 0 : index
      %c0_12 = arith.constant 0 : index
      %27 = vector.load %arg22[%c0_11, %c0_12] : memref<1x64xf32, #tpu.memory_space<vmem>>, vector<1x64xf32>
      %28 = vector.broadcast %27 : vector<1x64xf32> to vector<8x64xf32>
      %29 = arith.addf %26, %28 : vector<8x64xf32>
      %cst = arith.constant 0.000000e+00 : f32
      %30 = vector.broadcast %cst : f32 to vector<8x64xf32>
      %31 = arith.maximumf %29, %30 : vector<8x64xf32>
      %c0_13 = arith.constant 0 : index
      %c0_14 = arith.constant 0 : index
      %32 = vector.load %arg11[%c0_13, %c0_14] : memref<64x128xf32, #tpu.memory_space<vmem>>, vector<64x128xf32>
      %cst_15 = arith.constant dense<0.000000e+00> : vector<8x128xf32>
      %33 = tpu.matmul %31, %32, %cst_15 {dimension_numbers = #tpu.dot_dimension_numbers<[1], [0], [0], [1], [0, 0, 1, 1], [], []>} : vector<8x64xf32>, vector<64x128xf32>, vector<8x128xf32> -> vector<8x128xf32>
      %c0_16 = arith.constant 0 : index
      %c0_17 = arith.constant 0 : index
      %34 = vector.load %arg12[%c0_16, %c0_17] : memref<1x128xf32, #tpu.memory_space<vmem>>, vector<1x128xf32>
      %35 = vector.broadcast %34 : vector<1x128xf32> to vector<8x128xf32>
      %36 = arith.addf %33, %35 : vector<8x128xf32>
      %37 = arith.index_cast %1 : i32 to index
      %c0_18 = arith.constant 0 : index
      %38 = vector.load %arg18[%37, %c0_18] : memref<8x128xf32, #tpu.memory_space<vmem>>, vector<8x128xf32>
      tpu.vector_store %arg18[%37, %c0_18], %36 {strides = array<i32>} : memref<8x128xf32, #tpu.memory_space<vmem>>, vector<8x128xf32>,
      %c0_19 = arith.constant 0 : index
      %c0_20 = arith.constant 0 : index
      %39 = vector.load %arg23[%c0_19, %c0_20] : memref<1x128xf32, #tpu.memory_space<vmem>>, vector<1x128xf32>
      %cst_21 = arith.constant dense<0.000000e+00> : vector<128xf32>
      %40 = vector.multi_reduction <add>, %36, %cst_21 [0] : vector<8x128xf32> to vector<128xf32>
      %41 = vector.shape_cast %40 : vector<128xf32> to vector<1x128xf32>
      %42 = arith.addf %39, %41 : vector<1x128xf32>
      %c0_22 = arith.constant 0 : index
      %c0_23 = arith.constant 0 : index
      %43 = vector.load %arg23[%c0_22, %c0_23] : memref<1x128xf32, #tpu.memory_space<vmem>>, vector<1x128xf32>
      tpu.vector_store %arg23[%c0_22, %c0_23], %42 {strides = array<i32>} : memref<1x128xf32, #tpu.memory_space<vmem>>, vector<1x128xf32>,
      %c0_24 = arith.constant 0 : index
      %c0_25 = arith.constant 0 : index
      %44 = vector.load %arg24[%c0_24, %c0_25] : memref<1x128xf32, #tpu.memory_space<vmem>>, vector<1x128xf32>
      %45 = arith.mulf %36, %36 : vector<8x128xf32>
      %cst_26 = arith.constant dense<0.000000e+00> : vector<128xf32>
      %46 = vector.multi_reduction <add>, %45, %cst_26 [0] : vector<8x128xf32> to vector<128xf32>
      %47 = vector.shape_cast %46 : vector<128xf32> to vector<1x128xf32>
      %48 = arith.addf %44, %47 : vector<1x128xf32>
      %c0_27 = arith.constant 0 : index
      %c0_28 = arith.constant 0 : index
      %49 = vector.load %arg24[%c0_27, %c0_28] : memref<1x128xf32, #tpu.memory_space<vmem>>, vector<1x128xf32>
      tpu.vector_store %arg24[%c0_27, %c0_28], %48 {strides = array<i32>} : memref<1x128xf32, #tpu.memory_space<vmem>>, vector<1x128xf32>,
    } else {
    }
    %c3_i32 = arith.constant 3 : i32
    %16 = arith.cmpi eq, %arg0, %c3_i32 : i32
    %17 = arith.extui %16 : i1 to i32
    %c0_i32_6 = arith.constant 0 : i32
    %18 = arith.cmpi ne, %17, %c0_i32_6 : i32
    scf.if %18 {
      %c0_i32_7 = arith.constant 0 : i32
      %19 = arith.cmpi eq, %arg1, %c0_i32_7 : i32
      %20 = arith.extui %19 : i1 to i32
      %c0_i32_8 = arith.constant 0 : i32
      %21 = arith.cmpi ne, %20, %c0_i32_8 : i32
      scf.if %21 {
        %c0_15 = arith.constant 0 : index
        %c0_16 = arith.constant 0 : index
        %33 = vector.load %arg23[%c0_15, %c0_16] : memref<1x128xf32, #tpu.memory_space<vmem>>, vector<1x128xf32>
        %cst_17 = arith.constant 1.250000e-01 : f32
        %34 = vector.broadcast %cst_17 : f32 to vector<1x128xf32>
        %35 = arith.mulf %33, %34 : vector<1x128xf32>
        %c0_18 = arith.constant 0 : index
        %c0_19 = arith.constant 0 : index
        %36 = vector.load %arg24[%c0_18, %c0_19] : memref<1x128xf32, #tpu.memory_space<vmem>>, vector<1x128xf32>
        %cst_20 = arith.constant 1.250000e-01 : f32
        %37 = vector.broadcast %cst_20 : f32 to vector<1x128xf32>
        %38 = arith.mulf %36, %37 : vector<1x128xf32>
        %39 = arith.mulf %35, %35 : vector<1x128xf32>
        %40 = arith.subf %38, %39 : vector<1x128xf32>
        %cst_21 = arith.constant 0.000000e+00 : f32
        %41 = vector.broadcast %cst_21 : f32 to vector<1x128xf32>
        %42 = arith.maximumf %40, %41 : vector<1x128xf32>
        %c0_22 = arith.constant 0 : index
        %c0_23 = arith.constant 0 : index
        %43 = vector.load %arg13[%c0_22, %c0_23] : memref<1x128xf32, #tpu.memory_space<vmem>>, vector<1x128xf32>
        %cst_24 = arith.constant 9.99999974E-6 : f32
        %44 = vector.broadcast %cst_24 : f32 to vector<1x128xf32>
        %45 = arith.addf %42, %44 : vector<1x128xf32>
        %46 = math.rsqrt %45 : vector<1x128xf32>
        %47 = arith.mulf %43, %46 : vector<1x128xf32>
        %c0_25 = arith.constant 0 : index
        %c0_26 = arith.constant 0 : index
        %48 = vector.load %arg23[%c0_25, %c0_26] : memref<1x128xf32, #tpu.memory_space<vmem>>, vector<1x128xf32>
        tpu.vector_store %arg23[%c0_25, %c0_26], %47 {strides = array<i32>} : memref<1x128xf32, #tpu.memory_space<vmem>>, vector<1x128xf32>,
        %c0_27 = arith.constant 0 : index
        %c0_28 = arith.constant 0 : index
        %49 = vector.load %arg14[%c0_27, %c0_28] : memref<1x128xf32, #tpu.memory_space<vmem>>, vector<1x128xf32>
        %50 = arith.mulf %35, %47 : vector<1x128xf32>
        %51 = arith.subf %49, %50 : vector<1x128xf32>
        %c0_29 = arith.constant 0 : index
        %c0_30 = arith.constant 0 : index
        %52 = vector.load %arg24[%c0_29, %c0_30] : memref<1x128xf32, #tpu.memory_space<vmem>>, vector<1x128xf32>
        tpu.vector_store %arg24[%c0_29, %c0_30], %51 {strides = array<i32>} : memref<1x128xf32, #tpu.memory_space<vmem>>, vector<1x128xf32>,
      } else {
      }
      %22 = arith.index_cast %1 : i32 to index
      %c0 = arith.constant 0 : index
      %23 = vector.load %arg18[%22, %c0] : memref<8x128xf32, #tpu.memory_space<vmem>>, vector<8x128xf32>
      %c0_9 = arith.constant 0 : index
      %c0_10 = arith.constant 0 : index
      %24 = vector.load %arg23[%c0_9, %c0_10] : memref<1x128xf32, #tpu.memory_space<vmem>>, vector<1x128xf32>
      %25 = vector.broadcast %24 : vector<1x128xf32> to vector<8x128xf32>
      %26 = arith.mulf %23, %25 : vector<8x128xf32>
      %c0_11 = arith.constant 0 : index
      %c0_12 = arith.constant 0 : index
      %27 = vector.load %arg24[%c0_11, %c0_12] : memref<1x128xf32, #tpu.memory_space<vmem>>, vector<1x128xf32>
      %28 = vector.broadcast %27 : vector<1x128xf32> to vector<8x128xf32>
      %29 = arith.addf %26, %28 : vector<8x128xf32>
      %cst = arith.constant 0.000000e+00 : f32
      %30 = vector.broadcast %cst : f32 to vector<8x128xf32>
      %31 = arith.maximumf %29, %30 : vector<8x128xf32>
      %c0_13 = arith.constant 0 : index
      %c0_14 = arith.constant 0 : index
      %32 = vector.load %arg15[%c0_13, %c0_14] : memref<8x128xf32, #tpu.memory_space<vmem>>, vector<8x128xf32>
      tpu.vector_store %arg15[%c0_13, %c0_14], %31 {strides = array<i32>} : memref<8x128xf32, #tpu.memory_space<vmem>>, vector<8x128xf32>,
    } else {
    }
    return
  }
  func.func @transform_0(%arg0: i32, %arg1: i32) -> (i32, i32) {
    %c0_i32 = arith.constant 0 : i32
    %0 = arith.cmpi eq, %arg0, %c0_i32 : i32
    %c0_i32_0 = arith.constant 0 : i32
    %1 = arith.select %0, %arg1, %c0_i32_0 : i32
    %c0_i32_1 = arith.constant 0 : i32
    %c0_i32_2 = arith.constant 0 : i32
    return %1, %c0_i32_1 : i32, i32
  }
  func.func @transform_1(%arg0: i32, %arg1: i32) -> (i32, i32) {
    %c0_i32 = arith.constant 0 : i32
    %c0_i32_0 = arith.constant 0 : i32
    %c0_i32_1 = arith.constant 0 : i32
    return %c0_i32, %c0_i32_0 : i32, i32
  }
  func.func @transform_2(%arg0: i32, %arg1: i32) -> (i32, i32) {
    %c0_i32 = arith.constant 0 : i32
    %c0_i32_0 = arith.constant 0 : i32
    %c0_i32_1 = arith.constant 0 : i32
    return %c0_i32, %c0_i32_0 : i32, i32
  }
  func.func @transform_3(%arg0: i32, %arg1: i32) -> (i32, i32) {
    %c0_i32 = arith.constant 0 : i32
    %c0_i32_0 = arith.constant 0 : i32
    %c0_i32_1 = arith.constant 0 : i32
    return %c0_i32, %c0_i32_0 : i32, i32
  }
  func.func @transform_4(%arg0: i32, %arg1: i32) -> (i32, i32) {
    %c0_i32 = arith.constant 0 : i32
    %c0_i32_0 = arith.constant 0 : i32
    %c0_i32_1 = arith.constant 0 : i32
    return %c0_i32, %c0_i32_0 : i32, i32
  }
  func.func @transform_5(%arg0: i32, %arg1: i32) -> (i32, i32) {
    %c0_i32 = arith.constant 0 : i32
    %c0_i32_0 = arith.constant 0 : i32
    %c0_i32_1 = arith.constant 0 : i32
    return %c0_i32, %c0_i32_0 : i32, i32
  }
  func.func @transform_6(%arg0: i32, %arg1: i32) -> (i32, i32) {
    %c0_i32 = arith.constant 0 : i32
    %c0_i32_0 = arith.constant 0 : i32
    %c0_i32_1 = arith.constant 0 : i32
    return %c0_i32, %c0_i32_0 : i32, i32
  }
  func.func @transform_7(%arg0: i32, %arg1: i32) -> (i32, i32) {
    %c0_i32 = arith.constant 0 : i32
    %c0_i32_0 = arith.constant 0 : i32
    %c0_i32_1 = arith.constant 0 : i32
    return %c0_i32, %c0_i32_0 : i32, i32
  }
  func.func @transform_8(%arg0: i32, %arg1: i32) -> (i32, i32) {
    %c0_i32 = arith.constant 0 : i32
    %c0_i32_0 = arith.constant 0 : i32
    %c0_i32_1 = arith.constant 0 : i32
    return %c0_i32, %c0_i32_0 : i32, i32
  }
  func.func @transform_9(%arg0: i32, %arg1: i32) -> (i32, i32) {
    %c0_i32 = arith.constant 0 : i32
    %c0_i32_0 = arith.constant 0 : i32
    %c0_i32_1 = arith.constant 0 : i32
    return %c0_i32, %c0_i32_0 : i32, i32
  }
  func.func @transform_10(%arg0: i32, %arg1: i32) -> (i32, i32) {
    %c0_i32 = arith.constant 0 : i32
    %c0_i32_0 = arith.constant 0 : i32
    %c0_i32_1 = arith.constant 0 : i32
    return %c0_i32, %c0_i32_0 : i32, i32
  }
  func.func @transform_11(%arg0: i32, %arg1: i32) -> (i32, i32) {
    %c0_i32 = arith.constant 0 : i32
    %c0_i32_0 = arith.constant 0 : i32
    %c0_i32_1 = arith.constant 0 : i32
    return %c0_i32, %c0_i32_0 : i32, i32
  }
  func.func @transform_12(%arg0: i32, %arg1: i32) -> (i32, i32) {
    %c0_i32 = arith.constant 0 : i32
    %c0_i32_0 = arith.constant 0 : i32
    %c0_i32_1 = arith.constant 0 : i32
    return %c0_i32, %c0_i32_0 : i32, i32
  }
  func.func @transform_13(%arg0: i32, %arg1: i32) -> (i32, i32) {
    %c3_i32 = arith.constant 3 : i32
    %0 = arith.cmpi eq, %arg0, %c3_i32 : i32
    %c0_i32 = arith.constant 0 : i32
    %1 = arith.select %0, %arg1, %c0_i32 : i32
    %c0_i32_0 = arith.constant 0 : i32
    %c0_i32_1 = arith.constant 0 : i32
    return %1, %c0_i32_0 : i32, i32
  }
}

</mosaic_0001>

<bundles_post_ra>
// kernel: tpu_custom_call.1
= control target key start
LH: loop header
LB: loop body
LE: loop exit
PB: predicated region body
PF: predicated region fallthrough
CT: control target
= control target key end

     0   :  { %s1832_s0 = inlined_call_operand.hbm [shape: f32[8,12], index: 0, kind: input, shape index: {}]   ;;  %s1833_s1 = inlined_call_operand.hbm [shape: f32[12,32], index: 1, kind: input, shape index: {}]   ;;  %s1834_s2 = inlined_call_operand.vmem [shape: f32[1,32], index: 2, kind: input, shape index: {}]   ;;  %s1835_s3 = inlined_call_operand.vmem [shape: f32[1,32], index: 3, kind: input, shape index: {}]   ;;  %s1836_s4 = inlined_call_operand.vmem [shape: f32[1,32], index: 4, kind: input, shape index: {}]   ;;  %s1837_s5 = inlined_call_operand.hbm [shape: f32[32,64], index: 5, kind: input, shape index: {}]   ;;  %s1838_s6 = inlined_call_operand.vmem [shape: f32[1,64], index: 6, kind: input, shape index: {}]   ;;  %s1839_s7 = inlined_call_operand.vmem [shape: f32[1,64], index: 7, kind: input, shape index: {}]   ;;  %s1840_s8 = inlined_call_operand.vmem [shape: f32[1,64], index: 8, kind: input, shape index: {}]   ;;  %s1841_s9 = inlined_call_operand.hbm [shape: f32[64,128], index: 9, kind: input, shape index: {}]   ;;  %s1842_s10 = inlined_call_operand.vmem [shape: f32[1,128], index: 10, kind: input, shape index: {}]   ;;  %s1843_s11 = inlined_call_operand.vmem [shape: f32[1,128], index: 11, kind: input, shape index: {}]   ;;  %s1844_s12 = inlined_call_operand.vmem [shape: f32[1,128], index: 12, kind: input, shape index: {}]   ;;  %s1845_s13 = inlined_call_operand.hbm [shape: f32[8,128], index: 13, kind: output, shape index: {}]  }
   0x1   :  { %1852 = sst [smem:[#allocation26_spill]] %s1842_s10 }
   0x2   :  { %1853 = sst [smem:[#allocation27_spill]] %s1843_s11 }
   0x3   :  { %1854 = sst [smem:[#allocation28_spill]] %s1844_s12 }
   0x4   :  { %1855 = sst [smem:[#allocation29_spill]] %s1845_s13 }
   0x5   :  { %18 = vsyncpa [#allocation12], 0 }
   0x6   :  { %20 = vsyncpa [#allocation12 + $0x1], 0 }
   0x7   :  { %21 = vsyncpa [#allocation15], 0 }
   0x8   :  { %22 = vsyncpa [#allocation18], 0 }
   0x9   :  { %23 = vsyncpa [#allocation13], 0 }
   0xa   :  { %25 = vsyncpa [#allocation13 + $0x1], 0  ;;  %s1617_s25 = smov 0   ;;  %s1619_s26 = smov 0  }
   0xb   :  { %s1621_s27 = smov 0  }
   0xc LB: > { %1856 = sst [smem:[#allocation24_spill]] %s1523_s26  ;;  %s1846_s28 = sadd.s32 4294967295, %s1527_s27   ;;  %s1527_s27 = sphi %s1621_s27, %s31_s27   ;;  %s1523_s26 = sphi %s1619_s26, %s1874_s26   ;;  %s1519_s25 = sphi %s1617_s25, %s1873_s25  }
   0xd   : > { %s43_s30 = sadd.s32 1, %s1523_s26  ;;  %p1143_p0 = scmp.ge.s32.totalorder %s1527_s27, 1 }
   0xe   : > { %p45_p1 = scmp.ge.s32.totalorder %s43_s30, 4  ;;  %p360_p2 = scmp.lt.s32.totalorder %s1527_s27, 5 }
   0xf   : > { %p1639_p3 = scmp.eq.s32.totalorder %s1846_s28, 0  ;;  %s1529_s16 = smov [#allocation14]  }
  0x10   : > { %s1876_s30 = smov (%p45_p1, %s43_s30), 0  ;;  %p1645_p4 = pnand %p1143_p0, %p360_p2 }
  0x11   : > { %s1857_s14 = scalar_select %p1639_p3, 1, 0 }
  0x12   : > { %1858 = sst [smem:[#allocation25_spill]] %s1876_s30  ;;  %s372_s17 = sshll.u32 %s1529_s16, 4  ;;  %s373_s17 = int_to_ptr.vmem [resolvable:$true] %s372_s17 }
  0x13   : > { %s1859_s15 = scalar_select %p1645_p4, 1, 0 }
  0x14   : > { %p1273_p5 = pneg %p1645_p4  ;;  %s1530_s19 = smov [#allocation16]  }
  0x15   : > { %s394_s20 = sshll.u32 %s1530_s19, 4  ;;  %s1351_s23 = scalar_lea.hbm %s1833_s1, 256  ;;  %s395_s20 = int_to_ptr.vmem [resolvable:$true] %s394_s20 }
  0x16   : > { %p1653_p6 = pnand %p1639_p3, %p1273_p5  ;;  %p1352_p7 = scmp.ne.s32.totalorder %s1833_s1, %s1351_s23 }
  0x17   : > { %p1358_p11 = scmp.lt.u32.totalorder %s1351_s23, %s1833_s1 }
  0x18   : > { %p1665_p8 = pneg %p1653_p6 }
  0x1a   : > { %p1354_p9 = pnand %p1665_p8, %p1352_p7 }
  0x1c   : > { %p1355_p10 = pneg %p1354_p9 }
  0x1e   : > { %p1360_p12 = pnand %p1358_p11, %p1355_p10 }
  0x20   : > { %1363 = shalt.err (!%p1360_p12)
}
  0x21   : > { %s1364_s19 = scalar_lea.vmem %s373_s17, 256  ;;  %p1372_p2 = scmp.lt.s32.totalorder %s373_s17, %s373_s17 }
  0x22   : > { %p1365_p13 = scmp.ne.s32.totalorder %s373_s17, %s1364_s19  ;;  %p1373_p5 = scmp.lt.s32.totalorder %s1364_s19, %s1364_s19 }
  0x24   : > { %p1367_p0 = pnand %p1365_p13, %p1665_p8  ;;  %p1374_p3 = por %p1373_p5, %p1372_p2 }
  0x26   : > { %p1368_p1 = pneg %p1367_p0 }
  0x28   : > { %p1375_p4 = pnand %p1374_p3, %p1368_p1 }
  0x2a   : > { %1378 = shalt.err (!%p1375_p4)
}
  0x2b   : > { %s1531_s29 = smov 128   ;;  %s1532_s21 = smov 8  }
  0x2c   : > { %1276 = dma.hbm_to_vmem [thread:$0]  (!%p1653_p6), %s1833_s1, 256, %s373_s17, [#allocation15], %s1531_s29, %s1531_s29, %s1532_s21  }
  0x2d   : > { %s1533_s22 = smov [#allocation17]   ;;  %s1379_s26 = scalar_lea.hbm %s1837_s5, 512 }
  0x2e   : > { %s416_s23 = sshll.u32 %s1533_s22, 4  ;;  %p1380_p3 = scmp.ne.s32.totalorder %s1837_s5, %s1379_s26  ;;  %s417_s23 = int_to_ptr.vmem [resolvable:$true] %s416_s23 }
  0x2f   : > { %p1386_p9 = scmp.lt.u32.totalorder %s1379_s26, %s1837_s5 }
  0x30   : > { %p1382_p4 = pnand %p1380_p3, %p1665_p8 }
  0x32   : > { %p1383_p7 = pneg %p1382_p4 }
  0x34   : > { %p1388_p10 = pnand %p1386_p9, %p1383_p7 }
  0x36   : > { %1391 = shalt.err (!%p1388_p10)
}
  0x37   : > { %s1392_s17 = scalar_lea.vmem %s395_s20, 512  ;;  %p1400_p0 = scmp.lt.s32.totalorder %s395_s20, %s395_s20 }
  0x38   : > { %p1393_p11 = scmp.ne.s32.totalorder %s395_s20, %s1392_s17  ;;  %p1401_p1 = scmp.lt.s32.totalorder %s1392_s17, %s1392_s17 }
  0x3a   : > { %p1395_p12 = pnand %p1393_p11, %p1665_p8  ;;  %p1402_p2 = por %p1401_p1, %p1400_p0 }
  0x3c   : > { %p1396_p13 = pneg %p1395_p12 }
  0x3e   : > { %p1403_p5 = pnand %p1402_p2, %p1396_p13 }
  0x40   : > { %1406 = shalt.err (!%p1403_p5)
}
  0x41   : > { %1279 = dma.hbm_to_vmem [thread:$0]  (!%p1653_p6), %s1837_s5, 512, %s395_s20, [#allocation15], %s1531_s29, %s1531_s29, %s1532_s21  }
  0x42   : > { %s1407_s26 = scalar_lea.hbm %s1841_s9, 1024 }
  0x43   : > { %p1408_p4 = scmp.ne.s32.totalorder %s1841_s9, %s1407_s26  ;;  %p1414_p10 = scmp.lt.u32.totalorder %s1407_s26, %s1841_s9 }
  0x45   : > { %p1410_p7 = pnand %p1408_p4, %p1665_p8 }
  0x47   : > { %p1411_p9 = pneg %p1410_p7 }
  0x49   : > { %p1416_p11 = pnand %p1414_p10, %p1411_p9 }
  0x4b   : > { %1419 = shalt.err (!%p1416_p11)
}
  0x4c   : > { %s1420_s20 = scalar_lea.vmem %s417_s23, 1024  ;;  %p1428_p1 = scmp.lt.s32.totalorder %s417_s23, %s417_s23 }
  0x4d   : > { %p1421_p12 = scmp.ne.s32.totalorder %s417_s23, %s1420_s20  ;;  %p1429_p2 = scmp.lt.s32.totalorder %s1420_s20, %s1420_s20 }
  0x4f   : > { %p1423_p13 = pnand %p1421_p12, %p1665_p8  ;;  %p1430_p5 = por %p1429_p2, %p1428_p1 }
  0x51   : > { %p1424_p0 = pneg %p1423_p13 }
  0x53   : > { %p1431_p3 = pnand %p1430_p5, %p1424_p0 }
  0x55   : > { %1434 = shalt.err (!%p1431_p3)
}
  0x56   : > { %1282 = dma.hbm_to_vmem [thread:$0]  (!%p1653_p6), %s1841_s9, 1024, %s417_s23, [#allocation18], %s1531_s29, %s1531_s29, %s1532_s21  }
  0x57   : > { %p1295_p4 = scmp.eq.s32.totalorder %s1527_s27, 0  ;;  %s1534_s16 = smov [#allocation11]  }
  0x58   : > { %s452_s10 = sshll.u32 %s1534_s16, 4  ;;  %p1862_p8 = scmp.lt.s32.totalorder %s1527_s27, 4  ;;  %s453_s10 = int_to_ptr.vmem [resolvable:$true] %s452_s10 }
  0x59   : > { %s1435_s13 = scalar_lea.hbm %s1832_s0, 128 }
  0x5a   : > { %p1730_p7 = pnand %p1295_p4, %p1862_p8  ;;  %p1436_p3 = scmp.ne.s32.totalorder %s1832_s0, %s1435_s13 }
  0x5b   : > { %p1442_p11 = scmp.lt.u32.totalorder %s1435_s13, %s1832_s0 }
  0x5c   : > { %p1437_p6 = pneg %p1730_p7 }
  0x5e   : > { %p1438_p9 = pnand %p1437_p6, %p1436_p3 }
  0x60   : > { %p1439_p10 = pneg %p1438_p9 }
  0x62   : > { %p1444_p12 = pnand %p1442_p11, %p1439_p10 }
  0x64   : > { %1447 = shalt.err (!%p1444_p12)
}
  0x65   : > { %s1448_s23 = scalar_lea.vmem %s453_s10, 128  ;;  %s1455_s30 = scalar_lea.vmem %s453_s10, 256 }
  0x66   : > { %p1449_p13 = scmp.ne.s32.totalorder %s453_s10, %s1448_s23  ;;  %p1456_p2 = scmp.lt.s32.totalorder %s453_s10, %s453_s10 }
  0x67   : > { %p1457_p5 = scmp.lt.s32.totalorder %s1455_s30, %s1448_s23 }
  0x68   : > { %p1451_p0 = pnand %p1449_p13, %p1437_p6 }
  0x69   : > { %p1458_p4 = por %p1457_p5, %p1456_p2 }
  0x6a   : > { %p1452_p1 = pneg %p1451_p0 }
  0x6c   : > { %p1459_p8 = pnand %p1458_p4, %p1452_p1 }
  0x6e   : > { %1462 = shalt.err (!%p1459_p8)
}
  0x6f   : > { %1286 = dma.hbm_to_vmem [thread:$0]  (!%p1730_p7), %s1832_s0, 128, %s453_s10, [#allocation12]  }
  0x70   : > { %p1864_p3 = scmp.ne.s32.totalorder %s1859_s15, 0 }
  0x71   : > { %p1865_p9 = scmp.ne.s32.totalorder (!%p1864_p3), %s1857_s14, 0 }
  0x72   : > { %461 = sbr.rel (%p1864_p3) target bundleno = 999 (0x3e7), region = 72 }
  0x79   : > { %1502 = dma.done.wait (%p1865_p9), [#allocation12], 128  }
  0x7a   : > { %1504 = vsyncadd (%p1865_p9), [#allocation12], 4294967168 }
  0x7b   : > { %1506 = dma.done.wait (%p1865_p9), [#allocation15], 768  }
  0x7c   : > { %1508 = vsyncadd (%p1865_p9), [#allocation15], 4294966528 }
  0x7d   : > { %1510 = dma.done.wait (%p1865_p9), [#allocation18], 1024  }
  0x7e   : > { %1512 = vsyncadd (%p1865_p9), [#allocation18], 4294966272  ;;  %p527_p7 = scmp.eq.s32.totalorder %s1519_s25, 0 }
  0x7f   : > { %vm533_vm0 = vcmask (%p527_p7), 253952   ;;  %vm536_vm1 = vcmask (%p527_p7), 516096   ;;  %v1535_v0 = vmov (%p527_p7), 0.0  }
  0x80   : > { %532 = sbr.rel (!%p527_p7) target bundleno = 135 (0x87), region = 92  ;;  %534 = vst.msk [vmem:[#allocation5] sm:$0x1] (%p527_p7), %vm533_vm0, %v1535_v0  ;;  %535 = vst.msk [vmem:[#allocation6] sm:$0x1] (%p527_p7), %vm533_vm0, %v1535_v0 }
  0x81   : > { %539 = vst [vmem:[#allocation9] sm:$0x1] (%p527_p7), %v1535_v0  ;;  %540 = vst [vmem:[#allocation10] sm:$0x1] (%p527_p7), %v1535_v0 }
  0x82   : > { %537 = vst.msk [vmem:[#allocation7] sm:$0x1] (%p527_p7), %vm536_vm1, %v1535_v0  ;;  %538 = vst.msk [vmem:[#allocation8] sm:$0x1] (%p527_p7), %vm536_vm1, %v1535_v0 }
  0x87 PF: > { %p1155_p6 = scmp.ne.s32.totalorder %s1519_s25, 0 }
  0x88   : > { %v545_v1 = vld [vmem:[#allocation14] sm:$0xff] (!%p1155_p6)  ;;  %v546_v2 = vld [vmem:[#allocation14 + $0x8] sm:$0xf] (!%p1155_p6)  ;;  %vm558_vm2 = vcmask (!%p1155_p6), 1043456   ;;  %v1536_v3 = vmov (!%p1155_p6), 0.0|0.0   ;;  %vm1537_vm3 = vmmov (!%p1155_p6), 1  }
  0x89   : > { %543 = sbr.rel (%p1155_p6) target bundleno = 374 (0x176), region = 96  ;;  %1231 = vmatprep.subr.bf16.mxu0 (!%p1155_p6), %v1536_v3  ;;  %v1232_v4 = vpack.c.bf16 (!%p1155_p6), %v546_v2, %v545_v1  ;;  %vm1233_vm4 = vmpackc.low (!%p1155_p6), %vm558_vm2, %vm1537_vm3  ;;  %vm1538_vm5 = vmmov (!%p1155_p6), 0   ;;  %v1539_v5 = vmov (!%p1155_p6), 0.0   ;;  %v544_v6 = vld [vmem:[#allocation11] sm:$0xff] (!%p1155_p6)  ;;  %vm554_vm6 = vcmask (!%p1155_p6), 97280  }
  0x8a   : > { %1198 = vmatprep.mubr.msk.f32.mxu0 (!%p1155_p6), %vm1538_vm5, %v1539_v5  ;;  %v1156_v7 = vld [vmem:[%s1834_s2] ss:$0 sm:$0xff] (!%p1155_p6)  ;;  %vm633_vm7 = vcmask (!%p1155_p6), 261120   ;;  %v635_v23 = vld [vmem:[#allocation5] sm:$0x1] (!%p1155_p6)  ;;  %vm644_vm8 = vcmask (!%p1155_p6), 253952  }
  0x8b   : > { %1234 = vmatpush3.bf16.msk.msra.mxu0 (!%p1155_p6), %vm1233_vm4, %v1232_v4  ;;  %v646_v26 = vld [vmem:[#allocation6] sm:$0x1] (!%p1155_p6) }
  0x8e   : > { %1199 = vmatmul.mubr.msk.f32.vlgmr.msra.gmra.mrb[0].mxu0 (!%p1155_p6), %vm554_vm6, %v544_v6 }
 0x161   : > { %v628_v8 = vpop.f32.mrb[0].mxu0 }
 0x162   : > { %v629_v9 = vadd.f32 %v1156_v7, %v628_v8  ;;  %v1200_v10 = vpop.f32.mrb[1].mxu0 }
 0x164   : > { %634 = vst.msk [vmem:[#allocation2] sm:$0xff] %vm633_vm7, %v629_v9  ;;  %v636_v11 = vsel %vm633_vm7, %v629_v9, 0.0  ;;  %v647_v12 = vmul.f32 %v629_v9, %v629_v9 }
 0x165   : > { %v637_v13 = vrot.slane %v636_v11, 4 }
 0x166   : > { %v648_v14 = vsel %vm633_vm7, %v647_v12, 0.0 }
 0x167   : > { %v638_v15 = vadd.f32 %v637_v13, %v636_v11  ;;  %v649_v16 = vrot.slane %v648_v14, 4 }
 0x169   : > { %v639_v17 = vrot.slane %v638_v15, 2  ;;  %v650_v18 = vadd.f32 %v649_v16, %v648_v14 }
 0x16b   : > { %v640_v19 = vadd.f32 %v639_v17, %v638_v15  ;;  %v651_v20 = vrot.slane %v650_v18, 2 }
 0x16d   : > { %v641_v21 = vrot.slane %v640_v19, 1  ;;  %v652_v22 = vadd.f32 %v651_v20, %v650_v18 }
 0x16f   : > { %v642_v24 = vadd.f32 %v641_v21, %v640_v19  ;;  %v653_v25 = vrot.slane %v652_v22, 1 }
 0x171   : > { %v643_v27 = vadd.f32 %v642_v24, %v635_v23  ;;  %v654_v28 = vadd.f32 %v653_v25, %v652_v22 }
 0x173   : > { %645 = vst.msk [vmem:[#allocation5] sm:$0x1] %vm644_vm8, %v643_v27  ;;  %v655_v29 = vadd.f32 %v654_v28, %v646_v26 }
 0x175   : > { %656 = vst.msk [vmem:[#allocation6] sm:$0x1] %vm644_vm8, %v655_v29 }
 0x176 PF: > { %p1159_p10 = scmp.ne.s32.totalorder %s1519_s25, 1 }
 0x177   : > { %v700_v30 = vld [vmem:[#allocation16] sm:$0xff] (!%p1159_p10)  ;;  %v701_v31 = vld [vmem:[#allocation16 + $0x8] sm:$0xff] (!%p1159_p10)  ;;  %v702_v32 = vld [vmem:[#allocation16 + $0x10] sm:$0xff] (!%p1159_p10)  ;;  %v1540_v33 = vmov (!%p1159_p10), 0.0|0.0   ;;  %vm1541_vm9 = vmmov (!%p1159_p10), 0   ;;  %v1542_v36 = vmov (!%p1159_p10), 0.0  }
 0x178   : > { %660 = sbr.rel (%p1159_p10) target bundleno = 650 (0x28a), region = 100  ;;  %1235 = vmatprep.subr.bf16.mxu0 (!%p1159_p10), %v1540_v33  ;;  %v1236_v34 = vpack.c.bf16 (!%p1159_p10), %v701_v31, %v700_v30  ;;  %v703_v35 = vld [vmem:[#allocation16 + $0x18] sm:$0xff] (!%p1159_p10)  ;;  %1209 = vmatprep.mubr.msk.f32.mxu0 (!%p1159_p10), %vm1541_vm9, %v1542_v36  ;;  %v671_v46 = vld [vmem:[%s1835_s3] sm:$0x1] (!%p1159_p10)  ;;  %vm675_vm10 = vcmask (!%p1159_p10), 253952   ;;  %vm711_vm11 = vcmask (!%p1159_p10), 261120  }
 0x179   : > { %v1239_v41 = vpack.c.bf16 (!%p1159_p10), %v703_v35, %v702_v32  ;;  %v677_v49 = vld [vmem:[%s1836_s4] sm:$0x1] (!%p1159_p10)  ;;  %vm786_vm12 = vcmask (!%p1159_p10), 523264   ;;  %v788_v10 = vld [vmem:[#allocation7] sm:$0x1] (!%p1159_p10)  ;;  %vm797_vm13 = vcmask (!%p1159_p10), 516096  }
 0x17a   : > { %v664_v37 = vld [vmem:[#allocation5] sm:$0x1] (!%p1159_p10)  ;;  %1237 = vmatpush3.bf16.msra.mxu0 (!%p1159_p10), %v1236_v34  ;;  %v682_v52 = vld [vmem:[#allocation2] sm:$0xff] (!%p1159_p10)  ;;  %v799_v13 = vld [vmem:[#allocation8] sm:$0x1] (!%p1159_p10) }
 0x17b   : > { %v665_v39 = vmul.f32 (!%p1159_p10), 0.125, %v664_v37  ;;  %1238 = vmatprep.subr.bf16.mxu0 (!%p1159_p10), %v1540_v33  ;;  %v1162_v58 = vld [vmem:[%s1838_s6] ss:$0 sm:$0xff] (!%p1159_p10) }
 0x17c   : > { %v666_v38 = vld [vmem:[#allocation6] sm:$0x1] (!%p1159_p10) }
 0x17d   : > { %v667_v40 = vmul.f32 (!%p1159_p10), 0.125, %v666_v38  ;;  %v668_v42 = vmul.f32 (!%p1159_p10), %v665_v39, %v665_v39 }
 0x17e   : > { %1240 = vmatpush3.bf16.msra.mxu0 (!%p1159_p10), %v1239_v41 }
 0x17f   : > { %v669_v43 = vsub.f32 %v667_v40, %v668_v42 }
 0x181   : > { %v670_v44 = vmax.f32 %v669_v43, 0.0 }
 0x183   : > { %v672_v45 = vadd.f32 1e-05, %v670_v44 }
 0x185   : > { %1345 = vrsqrt.f32 %v672_v45 }
 0x18f   : > { %v1346_v47 = vpop.eup %1345 }
 0x190   : > { %v674_v48 = vmul.f32 %v1346_v47, %v671_v46 }
 0x192   : > { %676 = vst.msk [vmem:[#allocation5] sm:$0x1] %vm675_vm10, %v674_v48  ;;  %v678_v50 = vmul.f32 %v674_v48, %v665_v39 }
 0x194   : > { %v679_v51 = vsub.f32 %v677_v49, %v678_v50 }
 0x196   : > { %680 = vst.msk [vmem:[#allocation6] sm:$0x1] %vm675_vm10, %v679_v51 }
 0x199   : > { %v1160_v53 = vld [vmem:[#allocation5] ss:$0 sm:$0xff] }
 0x19a   : > { %v690_v54 = vmul.f32 %v1160_v53, %v682_v52 }
 0x19d   : > { %v1161_v55 = vld [vmem:[#allocation6] ss:$0 sm:$0xff] }
 0x19e   : > { %v698_v56 = vadd.f32 %v1161_v55, %v690_v54 }
 0x1a0   : > { %v699_v57 = vmax.f32 %v698_v56, 0.0 }
 0x1a2   : > { %1210 = vmatmul.mubr.msk.f32.vlgmr.msra.gmra.mrb[0].mxu0 %vm711_vm11, %v699_v57 }
 0x275   : > { %v781_v59 = vpop.f32.mrb[0].mxu0 }
 0x276   : > { %v782_v60 = vadd.f32 %v1162_v58, %v781_v59  ;;  %v1211_v61 = vpop.f32.mrb[1].mxu0 }
 0x278   : > { %787 = vst.msk [vmem:[#allocation3] sm:$0xff] %vm786_vm12, %v782_v60  ;;  %v789_v62 = vsel %vm786_vm12, %v782_v60, 0.0  ;;  %v800_v63 = vmul.f32 %v782_v60, %v782_v60 }
 0x279   : > { %v790_v0 = vrot.slane %v789_v62, 4 }
 0x27a   : > { %v801_v1 = vsel %vm786_vm12, %v800_v63, 0.0 }
 0x27b   : > { %v791_v2 = vadd.f32 %v790_v0, %v789_v62  ;;  %v802_v3 = vrot.slane %v801_v1, 4 }
 0x27d   : > { %v792_v4 = vrot.slane %v791_v2, 2  ;;  %v803_v5 = vadd.f32 %v802_v3, %v801_v1 }
 0x27f   : > { %v793_v6 = vadd.f32 %v792_v4, %v791_v2  ;;  %v804_v7 = vrot.slane %v803_v5, 2 }
 0x281   : > { %v794_v8 = vrot.slane %v793_v6, 1  ;;  %v805_v9 = vadd.f32 %v804_v7, %v803_v5 }
 0x283   : > { %v795_v11 = vadd.f32 %v794_v8, %v793_v6  ;;  %v806_v12 = vrot.slane %v805_v9, 1 }
 0x285   : > { %v796_v14 = vadd.f32 %v795_v11, %v788_v10  ;;  %v807_v15 = vadd.f32 %v806_v12, %v805_v9 }
 0x287   : > { %798 = vst.msk [vmem:[#allocation7] sm:$0x1] %vm797_vm13, %v796_v14  ;;  %v808_v16 = vadd.f32 %v807_v15, %v799_v13 }
 0x289   : > { %809 = vst.msk [vmem:[#allocation8] sm:$0x1] %vm797_vm13, %v808_v16 }
 0x28a PF: > { %p1164_p11 = scmp.ne.s32.totalorder %s1519_s25, 2 }
 0x28b   : > { %v853_v17 = vld [vmem:[#allocation17] sm:$0xff] (!%p1164_p11)  ;;  %v854_v18 = vld [vmem:[#allocation17 + $0x8] sm:$0xff] (!%p1164_p11)  ;;  %v855_v19 = vld [vmem:[#allocation17 + $0x10] sm:$0xff] (!%p1164_p11)  ;;  %v1543_v20 = vmov (!%p1164_p11), 0.0|0.0   ;;  %vm1544_vm14 = vmmov (!%p1164_p11), 0   ;;  %v1545_v23 = vmov (!%p1164_p11), 0.0  }
 0x28c   : > { %813 = sbr.rel (%p1164_p11) target bundleno = 925 (0x39d), region = 108  ;;  %1241 = vmatprep.subr.bf16.mxu0 (!%p1164_p11), %v1543_v20  ;;  %v1242_v21 = vpack.c.bf16 (!%p1164_p11), %v854_v18, %v853_v17  ;;  %v856_v22 = vld [vmem:[#allocation17 + $0x18] sm:$0xff] (!%p1164_p11)  ;;  %1228 = vmatprep.mubr.msk.f32.mxu0 (!%p1164_p11), %vm1544_vm14, %v1545_v23  ;;  %v857_v28 = vld [vmem:[#allocation17 + $0x20] sm:$0xff] (!%p1164_p11)  ;;  %v858_v29 = vld [vmem:[#allocation17 + $0x28] sm:$0xff] (!%p1164_p11)  ;;  %vm828_vm15 = vcmask (!%p1164_p11), 516096   ;;  %vm868_vm0 = vcmask (!%p1164_p11), 523264  }
 0x28d   : > { %v1245_v25 = vpack.c.bf16 (!%p1164_p11), %v856_v22, %v855_v19  ;;  %v1248_v32 = vpack.c.bf16 (!%p1164_p11), %v858_v29, %v857_v28  ;;  %v859_v34 = vld [vmem:[#allocation17 + $0x30] sm:$0xff] (!%p1164_p11)  ;;  %v860_v35 = vld [vmem:[#allocation17 + $0x38] sm:$0xff] (!%p1164_p11)  ;;  %v824_v39 = vld [vmem:[%s1839_s7] sm:$0x1] (!%p1164_p11)  ;;  %s1866_s21 = sld [smem:[#allocation26_spill]] (!%p1164_p11) }
 0x28e   : > { %v817_v24 = vld [vmem:[#allocation7] sm:$0x1] (!%p1164_p11)  ;;  %1243 = vmatpush3.bf16.msra.mxu0 (!%p1164_p11), %v1242_v21  ;;  %v1251_v37 = vpack.c.bf16 (!%p1164_p11), %v860_v35, %v859_v34  ;;  %v830_v42 = vld [vmem:[%s1840_s8] sm:$0x1] (!%p1164_p11)  ;;  %v835_v45 = vld [vmem:[#allocation3] sm:$0xff] (!%p1164_p11) }
 0x28f   : > { %v818_v26 = vmul.f32 (!%p1164_p11), 0.125, %v817_v24  ;;  %1244 = vmatprep.subr.bf16.mxu0 (!%p1164_p11), %v1543_v20  ;;  %v944_v1 = vld [vmem:[#allocation9] sm:$0x1] (!%p1164_p11)  ;;  %v953_v4 = vld [vmem:[#allocation10] sm:$0x1] (!%p1164_p11) }
 0x290   : > { %v819_v27 = vld [vmem:[#allocation8] sm:$0x1] (!%p1164_p11) }
 0x291   : > { %v820_v30 = vmul.f32 (!%p1164_p11), 0.125, %v819_v27  ;;  %v821_v31 = vmul.f32 (!%p1164_p11), %v818_v26, %v818_v26 }
 0x292   : > { %1246 = vmatpush3.bf16.msra.mxu0 (!%p1164_p11), %v1245_v25 }
 0x293   : > { %v822_v33 = vsub.f32 %v820_v30, %v821_v31  ;;  %1247 = vmatprep.subr.bf16.mxu0 %v1543_v20  ;;  %v1167_v51 = vld [vmem:[%s1866_s21] ss:$0 sm:$0xff] }
 0x295   : > { %v823_v36 = vmax.f32 %v822_v33, 0.0 }
 0x296   : > { %1249 = vmatpush3.bf16.msra.mxu0 %v1248_v32 }
 0x297   : > { %v825_v38 = vadd.f32 1e-05, %v823_v36  ;;  %1250 = vmatprep.subr.bf16.mxu0 %v1543_v20 }
 0x299   : > { %1347 = vrsqrt.f32 %v825_v38 }
 0x29a   : > { %1252 = vmatpush3.bf16.msra.mxu0 %v1251_v37 }
 0x2a3   : > { %v1348_v40 = vpop.eup %1347 }
 0x2a4   : > { %v827_v41 = vmul.f32 %v1348_v40, %v824_v39 }
 0x2a6   : > { %829 = vst.msk [vmem:[#allocation7] sm:$0x1] %vm828_vm15, %v827_v41  ;;  %v831_v43 = vmul.f32 %v827_v41, %v818_v26 }
 0x2a8   : > { %v832_v44 = vsub.f32 %v830_v42, %v831_v43 }
 0x2aa   : > { %833 = vst.msk [vmem:[#allocation8] sm:$0x1] %vm828_vm15, %v832_v44 }
 0x2ad   : > { %v1165_v46 = vld [vmem:[#allocation7] ss:$0 sm:$0xff] }
 0x2ae   : > { %v843_v47 = vmul.f32 %v1165_v46, %v835_v45 }
 0x2b1   : > { %v1166_v48 = vld [vmem:[#allocation8] ss:$0 sm:$0xff] }
 0x2b2   : > { %v851_v49 = vadd.f32 %v1166_v48, %v843_v47 }
 0x2b4   : > { %v852_v50 = vmax.f32 %v851_v49, 0.0 }
 0x2b6   : > { %1229 = vmatmul.mubr.msk.f32.vlgmr.msra.gmra.mrb[0].mxu0 %vm868_vm0, %v852_v50 }
 0x389   : > { %v938_v52 = vpop.f32.mrb[0].mxu0 }
 0x38a   : > { %v939_v53 = vadd.f32 %v1167_v51, %v938_v52  ;;  %v1230_v54 = vpop.f32.mrb[1].mxu0 }
 0x38c   : > { %943 = vst [vmem:[#allocation4] sm:$0xff] %v939_v53  ;;  %v945_v55 = vrot.slane %v939_v53, 4  ;;  %v954_v56 = vmul.f32 %v939_v53, %v939_v53 }
 0x38e   : > { %v946_v57 = vadd.f32 %v945_v55, %v939_v53  ;;  %v955_v58 = vrot.slane %v954_v56, 4 }
 0x390   : > { %v947_v59 = vrot.slane %v946_v57, 2  ;;  %v956_v60 = vadd.f32 %v955_v58, %v954_v56 }
 0x392   : > { %v948_v61 = vadd.f32 %v947_v59, %v946_v57  ;;  %v957_v62 = vrot.slane %v956_v60, 2 }
 0x394   : > { %v949_v63 = vrot.slane %v948_v61, 1  ;;  %v958_v0 = vadd.f32 %v957_v62, %v956_v60 }
 0x396   : > { %v950_v2 = vadd.f32 %v949_v63, %v948_v61  ;;  %v959_v3 = vrot.slane %v958_v0, 1 }
 0x398   : > { %v951_v5 = vadd.f32 %v950_v2, %v944_v1  ;;  %v960_v6 = vadd.f32 %v959_v3, %v958_v0 }
 0x39a   : > { %952 = vst [vmem:[#allocation9] sm:$0x1] %v951_v5  ;;  %v961_v7 = vadd.f32 %v960_v6, %v953_v4 }
 0x39c   : > { %962 = vst [vmem:[#allocation10] sm:$0x1] %v961_v7 }
 0x39d PF: > { %p1169_p12 = scmp.ne.s32.totalorder %s1519_s25, 3 }
 0x39e   : > { %s1867_s22 = sld [smem:[#allocation27_spill]] (!%p1169_p12)  ;;  %s1868_s15 = sld [smem:[#allocation28_spill]] (!%p1169_p12)  ;;  %v987_v22 = vld [vmem:[#allocation4] sm:$0xff] (!%p1169_p12) }
 0x39f   : > { %966 = sbr.rel (%p1169_p12) target bundleno = 970 (0x3ca), region = 116 }
 0x3a1   : > { %v970_v8 = vld [vmem:[#allocation9] sm:$0x1] (!%p1169_p12) }
 0x3a2   : > { %v971_v10 = vmul.f32 (!%p1169_p12), 0.125, %v970_v8 }
 0x3a3   : > { %v972_v9 = vld [vmem:[#allocation10] sm:$0x1] (!%p1169_p12) }
 0x3a4   : > { %v973_v11 = vmul.f32 (!%p1169_p12), 0.125, %v972_v9  ;;  %v974_v12 = vmul.f32 (!%p1169_p12), %v971_v10, %v971_v10  ;;  %v977_v16 = vld [vmem:[%s1867_s22] sm:$0x1] (!%p1169_p12) }
 0x3a5   : > { %v982_v19 = vld [vmem:[%s1868_s15] sm:$0x1] (!%p1169_p12) }
 0x3a6   : > { %v975_v13 = vsub.f32 %v973_v11, %v974_v12 }
 0x3a8   : > { %v976_v14 = vmax.f32 %v975_v13, 0.0 }
 0x3aa   : > { %v978_v15 = vadd.f32 1e-05, %v976_v14 }
 0x3ac   : > { %1349 = vrsqrt.f32 %v978_v15 }
 0x3b6   : > { %v1350_v17 = vpop.eup %1349 }
 0x3b7   : > { %v980_v18 = vmul.f32 %v1350_v17, %v977_v16 }
 0x3b9   : > { %981 = vst [vmem:[#allocation9] sm:$0x1] %v980_v18  ;;  %v983_v20 = vmul.f32 %v980_v18, %v971_v10 }
 0x3bb   : > { %v984_v21 = vsub.f32 %v982_v19, %v983_v20 }
 0x3bd   : > { %985 = vst [vmem:[#allocation10] sm:$0x1] %v984_v21 }
 0x3c0   : > { %v1170_v23 = vld [vmem:[#allocation9] ss:$0 sm:$0xff] }
 0x3c1   : > { %v995_v24 = vmul.f32 %v1170_v23, %v987_v22 }
 0x3c4   : > { %v1171_v25 = vld [vmem:[#allocation10] ss:$0 sm:$0xff] }
 0x3c5   : > { %v1003_v26 = vadd.f32 %v1171_v25, %v995_v24 }
 0x3c7   : > { %v1004_v27 = vmax.f32 %v1003_v26, 0.0 }
 0x3c9   : > { %1005 = vst [vmem:[#allocation19] sm:$0xff] %v1004_v27 }
 0x3ca PF: > { %s1869_s25 = sadd.s32 4294967295, %s1527_s27   ;;  %s1546_s19 = smov [#allocation19]  }
 0x3cb   : > { %p1798_p13 = scmp.eq.s32.totalorder %s1869_s25, 3  ;;  %s1022_s17 = sshll.u32 %s1546_s19, 4  ;;  %s1023_s17 = int_to_ptr.vmem [resolvable:$true] %s1022_s17 }
 0x3cc   : > { %s1463_s16 = scalar_lea.vmem %s1023_s17, 128  ;;  %s1469_s10 = scalar_lea.vmem %s1023_s17, 256 }
 0x3cd   : > { %p1464_p0 = scmp.ne.s32.totalorder %s1023_s17, %s1463_s16  ;;  %p1470_p5 = scmp.lt.s32.totalorder %s1023_s17, %s1023_s17 }
 0x3ce   : > { %p1471_p4 = scmp.lt.s32.totalorder %s1469_s10, %s1463_s16 }
 0x3cf   : > { %p1465_p1 = pnand %p1464_p0, %p1798_p13 }
 0x3d0   : > { %p1472_p8 = por %p1471_p4, %p1470_p5 }
 0x3d1   : > { %p1466_p2 = pneg %p1465_p1 }
 0x3d3   : > { %p1473_p3 = pnand %p1472_p8, %p1466_p2 }
 0x3d5   : > { %1476 = shalt.err (!%p1473_p3)
}
 0x3d6   : > { %s1871_s18 = sld [smem:[#allocation29_spill]] }
 0x3dc   : > { %s1477_s13 = scalar_lea.hbm %s1871_s18, 128 }
 0x3dd   : > { %p1478_p9 = scmp.ne.s32.totalorder %s1871_s18, %s1477_s13  ;;  %p1483_p10 = scmp.lt.u32.totalorder %s1477_s13, %s1871_s18 }
 0x3df   : > { %p1479_p7 = pnand %p1478_p9, %p1798_p13 }
 0x3e1   : > { %p1480_p6 = pneg %p1479_p7 }
 0x3e3   : > { %p1485_p11 = pnand %p1483_p10, %p1480_p6 }
 0x3e5   : > { %1488 = shalt.err (!%p1485_p11)
}
 0x3e6   : > { %1270 = dma.vmem_to_hbm [thread:$0]  (%p1798_p13), %s1023_s17, 128, %s1871_s18, [#allocation13]  }
 0x3e7 PF: > { %p1301_p12 = scmp.ge.s32.totalorder %s1527_s27, 2  ;;  %s1872_s22 = sadd.s32 4294967294, %s1527_s27  }
 0x3e8   : > { %p1302_p0 = scmp.eq.s32.totalorder %s1872_s22, 3 }
 0x3ea   : > { %p1288_p1 = pnand %p1302_p0, %p1301_p12 }
 0x3ec   : > { %1514 = dma.done.wait (!%p1288_p1), [#allocation13], 128  }
 0x3ed   : > { %1516 = vsyncadd (!%p1288_p1), [#allocation13], 4294967168  ;;  %s31_s27 = sadd.s32 1, %s1527_s27   ;;  %s1873_s25 = sld [smem:[#allocation24_spill]] }
 0x3ee   : > { %p28_p2 = scmp.ge.s32.totalorder %s31_s27, 6   ;;  %s1874_s26 = sld [smem:[#allocation25_spill]] }
 0x3f0   :  { %30 = sbr.rel (!%p28_p2) target bundleno = 12 (0xc), region = 167 }
 0x3f7   :  { %1040 = vsyncpa [#allocation12], 1 }
 0x3f8   :  { %1042 = vsyncpa [#allocation12 + $0x1], 1 }
 0x3f9   :  { %1043 = vsyncpa [#allocation15], 1 }
 0x3fa   :  { %1044 = vsyncpa [#allocation18], 1 }
 0x3fb   :  { %1045 = vsyncpa [#allocation13], 1 }
 0x3fc   :  { %1047 = vsyncpa [#allocation13 + $0x1], 1 }

</bundles_post_ra>
